<compile_context>
chip_gen: v5e
topology: v5e:2x2
jax: 0.10.0
libtpu: 0.0.40
codegen_flags: <defaults>
</compile_context>

<pallas_src>
import functools

import jax
import jax.numpy as jnp
from jax import lax
from jax.experimental import pallas as pl
from jax.experimental.pallas import tpu as pltpu


def _round_up(v, m):
    return ((v + m - 1) // m) * m


def _pick_n_tile(num_out):
    """Output/lane tile: <=256 wide, multiple of 128.  Returns (tn, n_pad)."""
    n128 = _round_up(num_out, 128)
    if n128 <= 256:
        return n128, n128                       # single N tile
    tn = 256
    return tn, _round_up(num_out, tn)


def _pick_k_tile(num_in):
    """K tile: multiple of 128 that divides num_in, else the whole K axis."""
    for tk in (512, 256, 128):
        if num_in % tk == 0:
            return tk
    return num_in                               # single K block (== full dim)


def _cond_linear_kernel(x_ref, wt_ref, b_ref, y_ref, e_ref, o_ref, acc_ref):
    # x_ref:  [tb, tk]    bf16 activation tile (batch on sublanes, K on lanes)
    # wt_ref: [tk, tn]    bf16 pre-transposed weight tile
    # b_ref:  [1,  tn]    f32 bias tile (zero-padded columns)
    # y_ref:  [tb, 1]     int32 timestep index per row
    # e_ref:  [sp, tn]    f32 embedding table tile (rows padded to x8)
    # o_ref:  [tb, tn]    lane-dense output tile (written at k == last)
    # acc_ref:[tb, tn]    f32 VMEM accumulator, resident across the K axis
    k = pl.program_id(2)

    @pl.when(k == 0)
    def _init():
        acc_ref[...] = jnp.zeros_like(acc_ref)

    # Canonical [M,K]@[K,N] MXU matmul, bf16 operands, f32 accumulation.
    acc_ref[...] += jnp.dot(x_ref[...], wt_ref[...],
                            preferred_element_type=jnp.float32)

    @pl.when(k == pl.num_programs(2) - 1)
    def _epilogue():
        out = acc_ref[...] + b_ref[...]          # f32 bias add

        # Fused embedding gather: gamma = onehot(y) @ embed_table (exact in
        # f32: each row of onehot selects exactly one table row).  n_steps is
        # tiny, so this is a cheap extra MXU op and avoids a [B, num_out]
        # gamma round trip through HBM.
        tb = y_ref.shape[0]
        sp = e_ref.shape[0]
        onehot = (y_ref[...] ==
                  lax.broadcasted_iota(jnp.int32, (tb, sp), 1))
        gamma = jnp.dot(onehot.astype(e_ref.dtype), e_ref[...],
                        preferred_element_type=jnp.float32)

        o_ref[...] = (out * gamma).astype(o_ref.dtype)


def make_conditional_linear(w, b, embed_weight, *, block_b=256,
                            compute_dtype=jnp.bfloat16,
                            out_dtype=jnp.float32):
    """One-time parameter layout prep + jitted forward.

    w: [num_out, num_in], b: [num_out], embed_weight: [n_steps, num_out].
    Returns apply(x: [B, num_in], y: [B] int) -> [B, num_out] (out_dtype).
    """
    num_out, num_in = w.shape
    n_steps = embed_weight.shape[0]

    tn, n_pad = _pick_n_tile(num_out)
    tk = _pick_k_tile(num_in)
    nk = num_in // tk
    s_pad = _round_up(n_steps, 8)

    # --- one-time layout prep (done here, NOT per forward call) -------------
    wt = jnp.pad(w.T, ((0, 0), (0, n_pad - num_out))).astype(compute_dtype)
    b2d = jnp.pad(b.reshape(1, num_out),
                  ((0, 0), (0, n_pad - num_out))).astype(jnp.float32)
    emb = jnp.pad(embed_weight,
                  ((0, s_pad - n_steps),
                   (0, n_pad - num_out))).astype(jnp.float32)

    cbytes = jnp.dtype(compute_dtype).itemsize
    obytes = jnp.dtype(out_dtype).itemsize

    @jax.jit
    def apply(x, y):
        B = x.shape[0]
        tb = min(_round_up(B, 8), block_b)
        nb = pl.cdiv(B, tb)          # partial last batch block handled by Pallas
        nn = n_pad // tn

        xq = x.astype(compute_dtype)
        y2 = y.astype(jnp.int32).reshape(B, 1)

        # Explicit VMEM budget: double-buffered tiles + f32 accumulator,
        # generous headroom, never below the default scoped limit.
        est = 2 * (tb * tk * cbytes + tk * tn * cbytes + tn * 4
                   + s_pad * tn * 4 + tb * 4 + tb * tn * obytes)
        est += tb * tn * 4
        vmem_limit = int(min(128 << 20, max(32 << 20, 2 * est)))

        out = pl.pallas_call(
            _cond_linear_kernel,
            out_shape=jax.ShapeDtypeStruct((B, n_pad), out_dtype),
            grid_spec=pltpu.PrefetchScalarGridSpec(
                num_scalar_prefetch=0,
                grid=(nb, nn, nk),
                in_specs=[
                    pl.BlockSpec((tb, tk), lambda i, j, k: (i, k)),      # x
                    pl.BlockSpec((tk, tn), lambda i, j, k: (k, j)),      # W^T
                    pl.BlockSpec((1, tn), lambda i, j, k: (0, j)),       # bias
                    pl.BlockSpec((tb, 1), lambda i, j, k: (i, 0)),       # y
                    pl.BlockSpec((s_pad, tn), lambda i, j, k: (0, j)),   # embed
                ],
                out_specs=pl.BlockSpec((tb, tn), lambda i, j, k: (i, j)),
                scratch_shapes=[pltpu.VMEM((tb, tn), jnp.float32)],
            ),
            compiler_params=pltpu.CompilerParams(
                dimension_semantics=("parallel", "parallel", "arbitrary"),
                vmem_limit_bytes=vmem_limit,
            ),
        )(xq, wt, b2d, y2, emb)

        # Drop the lane-padding columns (no-op slice when already x128).
        return out[:, :num_out] if n_pad != num_out else out

    return apply


def conditional_linear(x, y, w, b, embed_weight, **kwargs):
    """Convenience one-shot wrapper (prep + apply)."""
    return make_conditional_linear(w, b, embed_weight, **kwargs)(x, y)


if __name__ == "__main__":
    # Small shapes consistent with the module.
    B = 8
    num_in = 32
    num_out = 32
    n_steps = 10

    key = jax.random.PRNGKey(0)
    k_x, k_y, k_w, k_b, k_e = jax.random.split(key, 5)

    # Parameter init mirroring the PyTorch __init__ shapes:
    #   nn.Linear(num_in, num_out): weight [num_out, num_in], bias [num_out]
    #   nn.Embedding(n_steps, num_out).weight.uniform_() -> U[0, 1)
    bound = 1.0 / jnp.sqrt(num_in)
    w = jax.random.uniform(k_w, (num_out, num_in), jnp.float32, -bound, bound)
    b = jax.random.uniform(k_b, (num_out,), jnp.float32, -bound, bound)
    embed_weight = jax.random.uniform(k_e, (n_steps, num_out), jnp.float32)

    x = jax.random.normal(k_x, (B, num_in), jnp.float32)
    y = jax.random.randint(k_y, (B,), 0, n_steps, jnp.int32)

    apply_fn = make_conditional_linear(w, b, embed_weight)
    out = jax.block_until_ready(apply_fn(x, y))
    assert out.shape == (B, num_out)
    assert out.dtype == jnp.float32

    # Reference 1: same bf16 quantization of x / W as the kernel sees, f32
    # accumulation and f32 bias/gamma epilogue -> should match tightly.
    xq = x.astype(jnp.bfloat16).astype(jnp.float32)
    wq = w.astype(jnp.bfloat16).astype(jnp.float32)
    ref_q = (xq @ wq.T + b) * embed_weight[y]
    assert jnp.allclose(out, ref_q, atol=1e-4, rtol=1e-4)

    # Reference 2: full-f32 PyTorch-equivalent forward, bf16-level tolerance.
    ref_f32 = (x @ w.T + b) * embed_weight[y]
    assert jnp.allclose(out, ref_f32, atol=3e-2, rtol=3e-2)

    print("KERNEL_OK")
</pallas_src>

<mosaic_0001>
module attributes {stable_mosaic.version = 11 : i64} {
  func.func @_cond_linear_kernel(%arg0: i32, %arg1: i32, %arg2: i32, %arg3: memref<8x32xbf16, #tpu.memory_space<vmem>>, %arg4: memref<32x128xbf16, #tpu.memory_space<vmem>>, %arg5: memref<1x128xf32, #tpu.memory_space<vmem>>, %arg6: memref<8x1xi32, #tpu.memory_space<vmem>>, %arg7: memref<16x128xf32, #tpu.memory_space<vmem>>, %arg8: memref<8x128xf32, #tpu.memory_space<vmem>>, %arg9: memref<8x128xf32, #tpu.memory_space<vmem>>) attributes {dimension_semantics = [#tpu.dimension_semantics<parallel>, #tpu.dimension_semantics<parallel>, #tpu.dimension_semantics<arbitrary>], iteration_bounds = array<i64: 1, 1, 1>, scalar_prefetch = 0 : i64, scratch_operands = 1 : i64, tpu.core_type = #tpu.core_type<tc>, window_params = [{transform_indices = @transform_0, window_bounds = array<i64: 8, 32>}, {transform_indices = @transform_1, window_bounds = array<i64: 32, 128>}, {transform_indices = @transform_2, window_bounds = array<i64: 1, 128>}, {transform_indices = @transform_3, window_bounds = array<i64: 8, 1>}, {transform_indices = @transform_4, window_bounds = array<i64: 16, 128>}, {transform_indices = @transform_5, window_bounds = array<i64: 8, 128>}]} {
    %c0_i32 = arith.constant 0 : i32
    %0 = arith.cmpi eq, %arg2, %c0_i32 : i32
    %1 = arith.extui %0 : i1 to i32
    %c0_i32_0 = arith.constant 0 : i32
    %2 = arith.cmpi ne, %1, %c0_i32_0 : i32
    scf.if %2 {
      %cst_10 = arith.constant 0.000000e+00 : f32
      %12 = vector.broadcast %cst_10 : f32 to vector<8x128xf32>
      %c0_11 = arith.constant 0 : index
      %c0_12 = arith.constant 0 : index
      %13 = vector.load %arg9[%c0_11, %c0_12] : memref<8x128xf32, #tpu.memory_space<vmem>>, vector<8x128xf32>
      tpu.vector_store %arg9[%c0_11, %c0_12], %12 {strides = array<i32>} : memref<8x128xf32, #tpu.memory_space<vmem>>, vector<8x128xf32>,
    } else {
    }
    %c0 = arith.constant 0 : index
    %c0_1 = arith.constant 0 : index
    %3 = vector.load %arg9[%c0, %c0_1] : memref<8x128xf32, #tpu.memory_space<vmem>>, vector<8x128xf32>
    %c0_2 = arith.constant 0 : index
    %c0_3 = arith.constant 0 : index
    %4 = vector.load %arg3[%c0_2, %c0_3] : memref<8x32xbf16, #tpu.memory_space<vmem>>, vector<8x32xbf16>
    %c0_4 = arith.constant 0 : index
    %c0_5 = arith.constant 0 : index
    %5 = vector.load %arg4[%c0_4, %c0_5] : memref<32x128xbf16, #tpu.memory_space<vmem>>, vector<32x128xbf16>
    %cst = arith.constant dense<0.000000e+00> : vector<8x128xf32>
    %6 = tpu.matmul %4, %5, %cst {dimension_numbers = #tpu.dot_dimension_numbers<[1], [0], [0], [1], [0, 0, 1, 1], [], []>} : vector<8x32xbf16>, vector<32x128xbf16>, vector<8x128xf32> -> vector<8x128xf32>
    %7 = arith.addf %3, %6 : vector<8x128xf32>
    %c0_6 = arith.constant 0 : index
    %c0_7 = arith.constant 0 : index
    %8 = vector.load %arg9[%c0_6, %c0_7] : memref<8x128xf32, #tpu.memory_space<vmem>>, vector<8x128xf32>
    tpu.vector_store %arg9[%c0_6, %c0_7], %7 {strides = array<i32>} : memref<8x128xf32, #tpu.memory_space<vmem>>, vector<8x128xf32>,
    %c0_i32_8 = arith.constant 0 : i32
    %9 = arith.cmpi eq, %arg2, %c0_i32_8 : i32
    %10 = arith.extui %9 : i1 to i32
    %c0_i32_9 = arith.constant 0 : i32
    %11 = arith.cmpi ne, %10, %c0_i32_9 : i32
    scf.if %11 {
      %c0_10 = arith.constant 0 : index
      %c0_11 = arith.constant 0 : index
      %12 = vector.load %arg9[%c0_10, %c0_11] : memref<8x128xf32, #tpu.memory_space<vmem>>, vector<8x128xf32>
      %c0_12 = arith.constant 0 : index
      %c0_13 = arith.constant 0 : index
      %13 = vector.load %arg5[%c0_12, %c0_13] : memref<1x128xf32, #tpu.memory_space<vmem>>, vector<1x128xf32>
      %14 = vector.broadcast %13 : vector<1x128xf32> to vector<8x128xf32>
      %15 = arith.addf %12, %14 : vector<8x128xf32>
      %c0_14 = arith.constant 0 : index
      %c0_15 = arith.constant 0 : index
      %16 = vector.load %arg6[%c0_14, %c0_15] : memref<8x1xi32, #tpu.memory_space<vmem>>, vector<8x1xi32>
      %17 = tpu.iota {dimensions = array<i32: 1>} : vector<8x16xi32>
      %18 = vector.broadcast %16 : vector<8x1xi32> to vector<8x16xi32>
      %19 = arith.cmpi eq, %18, %17 : vector<8x16xi32>
      %20 = arith.extui %19 : vector<8x16xi1> to vector<8x16xi32>
      %21 = arith.sitofp %20 : vector<8x16xi32> to vector<8x16xf32>
      %c0_16 = arith.constant 0 : index
      %c0_17 = arith.constant 0 : index
      %22 = vector.load %arg7[%c0_16, %c0_17] : memref<16x128xf32, #tpu.memory_space<vmem>>, vector<16x128xf32>
      %cst_18 = arith.constant dense<0.000000e+00> : vector<8x128xf32>
      %23 = tpu.matmul %21, %22, %cst_18 {dimension_numbers = #tpu.dot_dimension_numbers<[1], [0], [0], [1], [0, 0, 1, 1], [], []>} : vector<8x16xf32>, vector<16x128xf32>, vector<8x128xf32> -> vector<8x128xf32>
      %24 = arith.mulf %15, %23 : vector<8x128xf32>
      %c0_19 = arith.constant 0 : index
      %c0_20 = arith.constant 0 : index
      %25 = vector.load %arg8[%c0_19, %c0_20] : memref<8x128xf32, #tpu.memory_space<vmem>>, vector<8x128xf32>
      tpu.vector_store %arg8[%c0_19, %c0_20], %24 {strides = array<i32>} : memref<8x128xf32, #tpu.memory_space<vmem>>, vector<8x128xf32>,
    } else {
    }
    return
  }
  func.func @transform_0(%arg0: i32, %arg1: i32, %arg2: i32) -> (i32, i32) {
    %c0_i32 = arith.constant 0 : i32
    return %arg0, %arg2 : i32, i32
  }
  func.func @transform_1(%arg0: i32, %arg1: i32, %arg2: i32) -> (i32, i32) {
    %c0_i32 = arith.constant 0 : i32
    return %arg2, %arg1 : i32, i32
  }
  func.func @transform_2(%arg0: i32, %arg1: i32, %arg2: i32) -> (i32, i32) {
    %c0_i32 = arith.constant 0 : i32
    %c0_i32_0 = arith.constant 0 : i32
    return %c0_i32, %arg1 : i32, i32
  }
  func.func @transform_3(%arg0: i32, %arg1: i32, %arg2: i32) -> (i32, i32) {
    %c0_i32 = arith.constant 0 : i32
    %c0_i32_0 = arith.constant 0 : i32
    return %arg0, %c0_i32 : i32, i32
  }
  func.func @transform_4(%arg0: i32, %arg1: i32, %arg2: i32) -> (i32, i32) {
    %c0_i32 = arith.constant 0 : i32
    %c0_i32_0 = arith.constant 0 : i32
    return %c0_i32, %arg1 : i32, i32
  }
  func.func @transform_5(%arg0: i32, %arg1: i32, %arg2: i32) -> (i32, i32) {
    %c0_i32 = arith.constant 0 : i32
    return %arg0, %arg1 : i32, i32
  }
}

</mosaic_0001>

<bundles_post_ra>
// kernel: apply.1
= control target key start
LH: loop header
LB: loop body
LE: loop exit
PB: predicated region body
PF: predicated region fallthrough
CT: control target
= control target key end

     0   :  { %10 = vsyncpa [#allocation4], 0  ;;  %s273_s0 = inlined_call_operand.vmem [shape: bf16[8,32], index: 0, kind: input, shape index: {}]   ;;  %s274_s1 = inlined_call_operand.hbm [shape: bf16[32,128], index: 1, kind: input, shape index: {}]   ;;  %s275_s2 = inlined_call_operand.vmem [shape: f32[1,128], index: 2, kind: input, shape index: {}]   ;;  %s276_s3 = inlined_call_operand.vmem [shape: s32[8,1], index: 3, kind: input, shape index: {}]   ;;  %s277_s4 = inlined_call_operand.vmem [shape: f32[16,128], index: 4, kind: input, shape index: {}]   ;;  %s278_s5 = inlined_call_operand.hbm [shape: f32[8,128], index: 5, kind: output, shape index: {}]  }
   0x1   :  { %11 = vsyncpa [#allocation5], 0  ;;  %s18_s20 = sshll.u32 %s274_s1, 4  ;;  %s216_s21 = smov [#allocation3]   ;;  %s19_s20 = int_to_ptr.hbm [resolvable:$true] %s18_s20 }
   0x2   :  { %s20_s22 = sshll.u32 %s216_s21, 4  ;;  %s217_s23 = smov 64   ;;  %s21_s22 = int_to_ptr.vmem [resolvable:$true] %s20_s22 }
   0x3   :  { %s218_s24 = smov 4  }
   0x4   :  { %26 = dma.hbm_to_vmem [thread:$0]  %s19_s20, 256, %s21_s22, [#allocation4], %s217_s23, %s217_s23, %s218_s24  }
   0x5   :  { %212 = dma.done.wait [#allocation4], 256  }
   0x6   :  { %213 = vsyncadd [#allocation4], 4294967040  ;;  %v219_v0 = vmov 0   ;;  %v89_v1 = vld [vmem:[%s276_s3] sm:$0xff]  ;;  %v155_v2 = vld [vmem:[#allocation3 + $0x8] sm:$0xff]  ;;  %vm61_vm0 = vcmask 261120   ;;  %v90_v7 = vlaneseq }
   0x7   :  { %162 = vset.pattern.permute.xlu0 %v219_v0  ;;  %v99_v3 = vld [vmem:[%s277_s4 + $0x8] sm:$0xff]  ;;  %71 = vmatpush.bf16.msra.mxu0 %v155_v2  ;;  %v154_v4 = vld [vmem:[#allocation3] sm:$0xff]  ;;  %vm100_vm1 = vcmask 130048   ;;  %v220_v10 = vmov 0.0  }
   0x8   :  { %93 = vperm.xlu0 %162, %v89_v1   ;;  %118 = vmatpush.msra.mxu1 %v99_v3  ;;  %v44_v5 = vld [vmem:[%s273_s0] sm:$0xf]  ;;  %v91_v8 = vand.u32 127, %v90_v7  ;;  %s221_s0 = smov [#allocation6]  }
   0x9   :  { %v98_v6 = vld [vmem:[%s277_s4] sm:$0xff]  ;;  %s131_s8 = sshll.u32 %s221_s0, 4  ;;  %s133_s4 = sshll.u32 %s278_s5, 4  ;;  %s132_s8 = int_to_ptr.vmem [resolvable:$true] %s131_s8  ;;  %s134_s4 = int_to_ptr.hbm [resolvable:$true] %s133_s4 }
   0xa   :  { %119 = vmatpush.msra.mxu1 %v98_v6  ;;  %v163_v14 = vld [vmem:[%s275_s2] ss:$0 sm:$0xff] }
   0xb   :  { %72 = vmatpush.bf16.msra.mxu0 %v154_v4 }
   0xe   :  { %151 = vmatmul.msk.bf16.vlgmr.msra.gmra.mxu0 %vm61_vm0, %v44_v5 }
  0x7a   :  { %v94_v9 = vpop.permute.xlu0 %93 }
  0x7b   :  { %vm95_vm2 = vcmp.eq.s32.totalorder %v94_v9, %v91_v8 }
  0x7c   :  { %v152_v11 = vsel %vm95_vm2, 1.0, %v220_v10 }
  0x7d   :  { %153 = vmatmul.msk.f32.vlgmr.msra.gmra.mxu1 %vm100_vm1, %v152_v11 }
  0x8b   :  { %v74_v12 = vpop.f32.mrf.mxu0 }
  0x8c   :  { %v88_v15 = vadd.f32 %v163_v14, %v74_v12 }
  0x93   :  { %v76_v13 = vpop.f32.mrf.mxu0 }
  0xfa   :  { %v121_v16 = vpop.f32.mrf.mxu1 }
  0xfb   :  { %v124_v17 = vmul.f32 %v121_v16, %v88_v15 }
  0xfd   :  { %125 = vst [vmem:[#allocation6] sm:$0xff] %v124_v17 }
  0xfe   :  { %136 = dma.vmem_to_hbm [thread:$0]  %s132_s8, 128, %s134_s4, [#allocation5]  }
  0xff   :  { %214 = dma.done.wait [#allocation5], 128  }
 0x100   :  { %215 = vsyncadd [#allocation5], 4294967168 }
 0x101   :  { %141 = vsyncpa [#allocation4], 1 }
 0x102   :  { %142 = vsyncpa [#allocation5], 1 }

</bundles_post_ra>
